<compile_context>
chip_gen: v6e
topology: v6e:2x2x1
jax: 0.10.0
libtpu: 0.0.40
codegen_flags: <defaults>
</compile_context>

<pallas_src>
import functools

import jax
import jax.numpy as jnp
from jax.experimental import pallas as pl
from jax.experimental.pallas import tpu as pltpu

IN_DIM = 28 * 28      # 784
HID = 64              # logical hidden width
HID_PAD = 128         # lane-padded hidden width
OUT = 10              # logical number of classes
OUT_PAD = 128         # lane-padded output width
NEG_BIG = -1e30       # bias for padded logit columns (finite, exp -> 0)


def _round_up(n, m):
    return (n + m - 1) // m * m


def mlp_kernel(x_ref, w1_ref, b1_ref, w2_ref, b2_ref, w3_ref, b3_ref,
               w4_ref, b4_ref, o_ref):
    # x arrives as f32 (single HBM read); cast to bf16 in-kernel for the MXU.
    x = x_ref[...].astype(jnp.bfloat16)
    # fc1 + relu   (bf16 inputs, f32 accumulation)
    h = jnp.dot(x, w1_ref[...], preferred_element_type=jnp.float32)
    h = jnp.maximum(h + b1_ref[...], 0.0).astype(jnp.bfloat16)
    # fc2 + relu
    h = jnp.dot(h, w2_ref[...], preferred_element_type=jnp.float32)
    h = jnp.maximum(h + b2_ref[...], 0.0).astype(jnp.bfloat16)
    # fc3 + relu
    h = jnp.dot(h, w3_ref[...], preferred_element_type=jnp.float32)
    h = jnp.maximum(h + b3_ref[...], 0.0).astype(jnp.bfloat16)
    # fc4 (logits, padded columns carry a -1e30 bias)
    logits = jnp.dot(h, w4_ref[...], preferred_element_type=jnp.float32)
    logits = logits + b4_ref[...]
    # log_softmax over the last dim (padded columns contribute ~0 to the sum)
    m = jnp.max(logits, axis=-1, keepdims=True)
    shifted = logits - m
    lse = jnp.log(jnp.sum(jnp.exp(shifted), axis=-1, keepdims=True))
    o_ref[...] = shifted - lse


def init_params(key):
    """Deterministic init matching nn.Linear shapes, stored as (in, out), f32."""
    ks = jax.random.split(key, 8)

    def lin(kw, kb, fan_in, fan_out):
        bound = 1.0 / jnp.sqrt(fan_in)
        w = jax.random.uniform(kw, (fan_in, fan_out), jnp.float32, -bound, bound)
        b = jax.random.uniform(kb, (1, fan_out), jnp.float32, -bound, bound)
        return w, b

    w1, b1 = lin(ks[0], ks[1], IN_DIM, HID)
    w2, b2 = lin(ks[2], ks[3], HID, HID)
    w3, b3 = lin(ks[4], ks[5], HID, HID)
    w4, b4 = lin(ks[6], ks[7], HID, OUT)
    return {"w1": w1, "b1": b1, "w2": w2, "b2": b2,
            "w3": w3, "b3": b3, "w4": w4, "b4": b4}


def prepare_params(p):
    """One-time: pad hidden/output dims to 128 lanes, cast weights to bf16."""
    dh = HID_PAD - HID
    do = OUT_PAD - OUT
    w1 = jnp.pad(p["w1"], ((0, 0), (0, dh))).astype(jnp.bfloat16)
    b1 = jnp.pad(p["b1"], ((0, 0), (0, dh)))                       # f32
    w2 = jnp.pad(p["w2"], ((0, dh), (0, dh))).astype(jnp.bfloat16)
    b2 = jnp.pad(p["b2"], ((0, 0), (0, dh)))
    w3 = jnp.pad(p["w3"], ((0, dh), (0, dh))).astype(jnp.bfloat16)
    b3 = jnp.pad(p["b3"], ((0, 0), (0, dh)))
    w4 = jnp.pad(p["w4"], ((0, dh), (0, do))).astype(jnp.bfloat16)
    # Padded logit columns get a huge negative bias so log_softmax is exact.
    b4 = jnp.pad(p["b4"], ((0, 0), (0, do)), constant_values=NEG_BIG)
    return (w1, b1, w2, b2, w3, b3, w4, b4)


@functools.partial(jax.jit, static_argnames=("tb",))
def net_forward(x, prepped, tb=2048):
    """x: (B, 784) float32; prepped: output of prepare_params."""
    w1, b1, w2, b2, w3, b3, w4, b4 = prepped
    B = x.shape[0]

    # Tile rows: multiple of 8 (f32 sublane), capped so the grid has >= 2 steps
    # for any non-trivial B (keeps both v7x TensorCores busy via "parallel"),
    # and capped at `tb` to bound VMEM (f32 x blocks at TB=2048 ~12 MiB
    # double-buffered -> total ~20 MiB, inside the raised limit on all chips).
    TB = min(tb, max(8, _round_up(-(-B // 2), 8)))
    B_pad = _round_up(B, TB)
    grid = (B_pad // TB,)

    # x stays f32: no wrapper-side cast pass.  Pad only when B is ragged.
    if B_pad != B:
        x = jnp.pad(x, ((0, B_pad - B), (0, 0)))

    # Weights/biases: constant index_map -> resident in VMEM across grid steps.
    resident = lambda arr: pl.BlockSpec(arr.shape, lambda i: (0,) * arr.ndim)

    cost = pl.CostEstimate(
        flops=2 * B_pad * (IN_DIM * HID_PAD + 2 * HID_PAD * HID_PAD
                           + HID_PAD * OUT_PAD),
        transcendentals=B_pad * (OUT_PAD + 1),
        bytes_accessed=(B_pad * IN_DIM * 4                     # x, f32, read once
                        + sum(a.size * a.dtype.itemsize
                              for a in (w1, b1, w2, b2, w3, b3, w4, b4))
                        + B_pad * OUT_PAD * 4),                # f32 output slab
    )

    out_pad = pl.pallas_call(
        mlp_kernel,
        out_shape=jax.ShapeDtypeStruct((B_pad, OUT_PAD), jnp.float32),
        grid=grid,
        in_specs=[
            pl.BlockSpec((TB, IN_DIM), lambda i: (i, 0)),   # x: batch-tiled, f32
            resident(w1), resident(b1),
            resident(w2), resident(b2),
            resident(w3), resident(b3),
            resident(w4), resident(b4),
        ],
        out_specs=pl.BlockSpec((TB, OUT_PAD), lambda i: (i, 0)),
        compiler_params=pltpu.CompilerParams(
            dimension_semantics=("parallel",),
            vmem_limit_bytes=48 * 1024 * 1024),   # v5e default 16 MiB is too low
        cost_estimate=cost,
    )(x, w1, b1, w2, b2, w3, b3, w4, b4)

    return out_pad[:B, :OUT]


def net_forward_ref(x, p):
    """Pure-JAX f32 reference matching the PyTorch module."""
    h = jnp.maximum(x @ p["w1"] + p["b1"], 0.0)
    h = jnp.maximum(h @ p["w2"] + p["b2"], 0.0)
    h = jnp.maximum(h @ p["w3"] + p["b3"], 0.0)
    logits = h @ p["w4"] + p["b4"]
    return jax.nn.log_softmax(logits, axis=1)


if __name__ == "__main__":
    key = jax.random.PRNGKey(0)
    kx, kp = jax.random.split(key)
    B = 8
    x = jax.random.normal(kx, (B, IN_DIM), jnp.float32)
    params = init_params(kp)
    prepped = prepare_params(params)

    out = net_forward(x, prepped)
    jax.block_until_ready(out)

    ref = net_forward_ref(x, params)
    assert out.shape == (B, OUT), out.shape
    # bf16 matmul inputs (f32 accumulation) vs pure-f32 reference -> loose tol.
    assert jnp.allclose(out, ref, atol=3e-2, rtol=3e-2), "mismatch vs reference"
    print("KERNEL_OK")
</pallas_src>

<mosaic_0001>
module attributes {stable_mosaic.version = 11 : i64} {
  func.func @mlp_kernel(%arg0: i32, %arg1: memref<8x784xf32, #tpu.memory_space<vmem>>, %arg2: memref<784x128xbf16, #tpu.memory_space<vmem>>, %arg3: memref<1x128xf32, #tpu.memory_space<vmem>>, %arg4: memref<128x128xbf16, #tpu.memory_space<vmem>>, %arg5: memref<1x128xf32, #tpu.memory_space<vmem>>, %arg6: memref<128x128xbf16, #tpu.memory_space<vmem>>, %arg7: memref<1x128xf32, #tpu.memory_space<vmem>>, %arg8: memref<128x128xbf16, #tpu.memory_space<vmem>>, %arg9: memref<1x128xf32, #tpu.memory_space<vmem>>, %arg10: memref<8x128xf32, #tpu.memory_space<vmem>>) attributes {dimension_semantics = [#tpu.dimension_semantics<parallel>], iteration_bounds = array<i64: 1>, scalar_prefetch = 0 : i64, scratch_operands = 0 : i64, tpu.core_type = #tpu.core_type<tc>, window_params = [{transform_indices = @transform_0, window_bounds = array<i64: 8, 784>}, {pipeline_mode = #tpu.pipeline_mode<synchronous>, transform_indices = @transform_1, window_bounds = array<i64: 784, 128>}, {pipeline_mode = #tpu.pipeline_mode<synchronous>, transform_indices = @transform_2, window_bounds = array<i64: 1, 128>}, {pipeline_mode = #tpu.pipeline_mode<synchronous>, transform_indices = @transform_3, window_bounds = array<i64: 128, 128>}, {pipeline_mode = #tpu.pipeline_mode<synchronous>, transform_indices = @transform_4, window_bounds = array<i64: 1, 128>}, {pipeline_mode = #tpu.pipeline_mode<synchronous>, transform_indices = @transform_5, window_bounds = array<i64: 128, 128>}, {pipeline_mode = #tpu.pipeline_mode<synchronous>, transform_indices = @transform_6, window_bounds = array<i64: 1, 128>}, {pipeline_mode = #tpu.pipeline_mode<synchronous>, transform_indices = @transform_7, window_bounds = array<i64: 128, 128>}, {pipeline_mode = #tpu.pipeline_mode<synchronous>, transform_indices = @transform_8, window_bounds = array<i64: 1, 128>}, {transform_indices = @transform_9, window_bounds = array<i64: 8, 128>}]} {
    %c0 = arith.constant 0 : index
    %c0_0 = arith.constant 0 : index
    %0 = vector.load %arg1[%c0, %c0_0] : memref<8x784xf32, #tpu.memory_space<vmem>>, vector<8x784xf32>
    %1 = arith.truncf %0 : vector<8x784xf32> to vector<8x784xbf16>
    %c0_1 = arith.constant 0 : index
    %c0_2 = arith.constant 0 : index
    %2 = vector.load %arg2[%c0_1, %c0_2] : memref<784x128xbf16, #tpu.memory_space<vmem>>, vector<784x128xbf16>
    %cst = arith.constant dense<0.000000e+00> : vector<8x128xf32>
    %3 = tpu.matmul %1, %2, %cst {dimension_numbers = #tpu.dot_dimension_numbers<[1], [0], [0], [1], [0, 0, 1, 1], [], []>} : vector<8x784xbf16>, vector<784x128xbf16>, vector<8x128xf32> -> vector<8x128xf32>
    %c0_3 = arith.constant 0 : index
    %c0_4 = arith.constant 0 : index
    %4 = vector.load %arg3[%c0_3, %c0_4] : memref<1x128xf32, #tpu.memory_space<vmem>>, vector<1x128xf32>
    %5 = vector.broadcast %4 : vector<1x128xf32> to vector<8x128xf32>
    %6 = arith.addf %3, %5 : vector<8x128xf32>
    %cst_5 = arith.constant 0.000000e+00 : f32
    %7 = vector.broadcast %cst_5 : f32 to vector<8x128xf32>
    %8 = arith.maximumf %6, %7 : vector<8x128xf32>
    %9 = arith.truncf %8 : vector<8x128xf32> to vector<8x128xbf16>
    %c0_6 = arith.constant 0 : index
    %c0_7 = arith.constant 0 : index
    %10 = vector.load %arg4[%c0_6, %c0_7] : memref<128x128xbf16, #tpu.memory_space<vmem>>, vector<128x128xbf16>
    %cst_8 = arith.constant dense<0.000000e+00> : vector<8x128xf32>
    %11 = tpu.matmul %9, %10, %cst_8 {dimension_numbers = #tpu.dot_dimension_numbers<[1], [0], [0], [1], [0, 0, 1, 1], [], []>} : vector<8x128xbf16>, vector<128x128xbf16>, vector<8x128xf32> -> vector<8x128xf32>
    %c0_9 = arith.constant 0 : index
    %c0_10 = arith.constant 0 : index
    %12 = vector.load %arg5[%c0_9, %c0_10] : memref<1x128xf32, #tpu.memory_space<vmem>>, vector<1x128xf32>
    %13 = vector.broadcast %12 : vector<1x128xf32> to vector<8x128xf32>
    %14 = arith.addf %11, %13 : vector<8x128xf32>
    %cst_11 = arith.constant 0.000000e+00 : f32
    %15 = vector.broadcast %cst_11 : f32 to vector<8x128xf32>
    %16 = arith.maximumf %14, %15 : vector<8x128xf32>
    %17 = arith.truncf %16 : vector<8x128xf32> to vector<8x128xbf16>
    %c0_12 = arith.constant 0 : index
    %c0_13 = arith.constant 0 : index
    %18 = vector.load %arg6[%c0_12, %c0_13] : memref<128x128xbf16, #tpu.memory_space<vmem>>, vector<128x128xbf16>
    %cst_14 = arith.constant dense<0.000000e+00> : vector<8x128xf32>
    %19 = tpu.matmul %17, %18, %cst_14 {dimension_numbers = #tpu.dot_dimension_numbers<[1], [0], [0], [1], [0, 0, 1, 1], [], []>} : vector<8x128xbf16>, vector<128x128xbf16>, vector<8x128xf32> -> vector<8x128xf32>
    %c0_15 = arith.constant 0 : index
    %c0_16 = arith.constant 0 : index
    %20 = vector.load %arg7[%c0_15, %c0_16] : memref<1x128xf32, #tpu.memory_space<vmem>>, vector<1x128xf32>
    %21 = vector.broadcast %20 : vector<1x128xf32> to vector<8x128xf32>
    %22 = arith.addf %19, %21 : vector<8x128xf32>
    %cst_17 = arith.constant 0.000000e+00 : f32
    %23 = vector.broadcast %cst_17 : f32 to vector<8x128xf32>
    %24 = arith.maximumf %22, %23 : vector<8x128xf32>
    %25 = arith.truncf %24 : vector<8x128xf32> to vector<8x128xbf16>
    %c0_18 = arith.constant 0 : index
    %c0_19 = arith.constant 0 : index
    %26 = vector.load %arg8[%c0_18, %c0_19] : memref<128x128xbf16, #tpu.memory_space<vmem>>, vector<128x128xbf16>
    %cst_20 = arith.constant dense<0.000000e+00> : vector<8x128xf32>
    %27 = tpu.matmul %25, %26, %cst_20 {dimension_numbers = #tpu.dot_dimension_numbers<[1], [0], [0], [1], [0, 0, 1, 1], [], []>} : vector<8x128xbf16>, vector<128x128xbf16>, vector<8x128xf32> -> vector<8x128xf32>
    %c0_21 = arith.constant 0 : index
    %c0_22 = arith.constant 0 : index
    %28 = vector.load %arg9[%c0_21, %c0_22] : memref<1x128xf32, #tpu.memory_space<vmem>>, vector<1x128xf32>
    %29 = vector.broadcast %28 : vector<1x128xf32> to vector<8x128xf32>
    %30 = arith.addf %27, %29 : vector<8x128xf32>
    %cst_23 = arith.constant dense<0xFF800000> : vector<8xf32>
    %31 = vector.multi_reduction <maximumf>, %30, %cst_23 [1] : vector<8x128xf32> to vector<8xf32>
    %32 = vector.shape_cast %31 : vector<8xf32> to vector<8x1xf32>
    %33 = vector.broadcast %32 : vector<8x1xf32> to vector<8x128xf32>
    %34 = arith.subf %30, %33 : vector<8x128xf32>
    %35 = math.exp %34 : vector<8x128xf32>
    %cst_24 = arith.constant dense<0.000000e+00> : vector<8xf32>
    %36 = vector.multi_reduction <add>, %35, %cst_24 [1] : vector<8x128xf32> to vector<8xf32>
    %37 = vector.shape_cast %36 : vector<8xf32> to vector<8x1xf32>
    %38 = math.log %37 : vector<8x1xf32>
    %39 = vector.broadcast %38 : vector<8x1xf32> to vector<8x128xf32>
    %40 = arith.subf %34, %39 : vector<8x128xf32>
    %c0_25 = arith.constant 0 : index
    %c0_26 = arith.constant 0 : index
    %41 = vector.load %arg10[%c0_25, %c0_26] : memref<8x128xf32, #tpu.memory_space<vmem>>, vector<8x128xf32>
    tpu.vector_store %arg10[%c0_25, %c0_26], %40 {strides = array<i32>} : memref<8x128xf32, #tpu.memory_space<vmem>>, vector<8x128xf32>,
    return
  }
  func.func @transform_0(%arg0: i32) -> (i32, i32) {
    %c0_i32 = arith.constant 0 : i32
    %c0_i32_0 = arith.constant 0 : i32
    return %arg0, %c0_i32 : i32, i32
  }
  func.func @transform_1(%arg0: i32) -> (i32, i32) {
    %c0_i32 = arith.constant 0 : i32
    %c0_i32_0 = arith.constant 0 : i32
    %c0_i32_1 = arith.constant 0 : i32
    return %c0_i32, %c0_i32_0 : i32, i32
  }
  func.func @transform_2(%arg0: i32) -> (i32, i32) {
    %c0_i32 = arith.constant 0 : i32
    %c0_i32_0 = arith.constant 0 : i32
    %c0_i32_1 = arith.constant 0 : i32
    return %c0_i32, %c0_i32_0 : i32, i32
  }
  func.func @transform_3(%arg0: i32) -> (i32, i32) {
    %c0_i32 = arith.constant 0 : i32
    %c0_i32_0 = arith.constant 0 : i32
    %c0_i32_1 = arith.constant 0 : i32
    return %c0_i32, %c0_i32_0 : i32, i32
  }
  func.func @transform_4(%arg0: i32) -> (i32, i32) {
    %c0_i32 = arith.constant 0 : i32
    %c0_i32_0 = arith.constant 0 : i32
    %c0_i32_1 = arith.constant 0 : i32
    return %c0_i32, %c0_i32_0 : i32, i32
  }
  func.func @transform_5(%arg0: i32) -> (i32, i32) {
    %c0_i32 = arith.constant 0 : i32
    %c0_i32_0 = arith.constant 0 : i32
    %c0_i32_1 = arith.constant 0 : i32
    return %c0_i32, %c0_i32_0 : i32, i32
  }
  func.func @transform_6(%arg0: i32) -> (i32, i32) {
    %c0_i32 = arith.constant 0 : i32
    %c0_i32_0 = arith.constant 0 : i32
    %c0_i32_1 = arith.constant 0 : i32
    return %c0_i32, %c0_i32_0 : i32, i32
  }
  func.func @transform_7(%arg0: i32) -> (i32, i32) {
    %c0_i32 = arith.constant 0 : i32
    %c0_i32_0 = arith.constant 0 : i32
    %c0_i32_1 = arith.constant 0 : i32
    return %c0_i32, %c0_i32_0 : i32, i32
  }
  func.func @transform_8(%arg0: i32) -> (i32, i32) {
    %c0_i32 = arith.constant 0 : i32
    %c0_i32_0 = arith.constant 0 : i32
    %c0_i32_1 = arith.constant 0 : i32
    return %c0_i32, %c0_i32_0 : i32, i32
  }
  func.func @transform_9(%arg0: i32) -> (i32, i32) {
    %c0_i32 = arith.constant 0 : i32
    %c0_i32_0 = arith.constant 0 : i32
    return %arg0, %c0_i32 : i32, i32
  }
}

</mosaic_0001>

<bundles_post_ra>
// kernel: net_forward.1
= control target key start
LH: loop header
LB: loop body
LE: loop exit
PB: predicated region body
PF: predicated region fallthrough
CT: control target
= control target key end

     0   :  { %14 = vsyncpa [#allocation3], 0  ;;  %s1633_s0 = inlined_call_operand.hbm [shape: f32[8,784], index: 0, kind: input, shape index: {}]   ;;  %s1634_s1 = inlined_call_operand.hbm [shape: bf16[784,128], index: 1, kind: input, shape index: {}]   ;;  %s1635_s2 = inlined_call_operand.vmem [shape: f32[1,128], index: 2, kind: input, shape index: {}]   ;;  %s1636_s3 = inlined_call_operand.hbm [shape: bf16[128,128], index: 3, kind: input, shape index: {}]   ;;  %s1637_s4 = inlined_call_operand.vmem [shape: f32[1,128], index: 4, kind: input, shape index: {}]   ;;  %s1638_s5 = inlined_call_operand.hbm [shape: bf16[128,128], index: 5, kind: input, shape index: {}]   ;;  %s1639_s6 = inlined_call_operand.vmem [shape: f32[1,128], index: 6, kind: input, shape index: {}]   ;;  %s1640_s7 = inlined_call_operand.hbm [shape: bf16[128,128], index: 7, kind: input, shape index: {}]   ;;  %s1641_s8 = inlined_call_operand.vmem [shape: f32[1,128], index: 8, kind: input, shape index: {}]   ;;  %s1642_s9 = inlined_call_operand.hbm [shape: f32[8,128], index: 9, kind: output, shape index: {}]  }
   0x1   :  { %15 = vsyncpa [#allocation6], 0 }
   0x2   :  { %16 = vsyncpa [#allocation9], 0 }
   0x3   :  { %17 = vsyncpa [#allocation4], 0  ;;  %s1498_s30 = smov [#allocation5]  }
   0x4   :  { %s33_s10 = sshll.u32 %s1498_s30, 4  ;;  %s34_s10 = int_to_ptr.vmem [resolvable:$true] %s33_s10 }
   0x5   :  { %s1378_s11 = scalar_lea.vmem %s34_s10, 6272  ;;  %p1383_p1 = scmp.lt.s32.totalorder %s34_s10, %s34_s10 }
   0x6   :  { %p1379_p0 = scmp.ne.s32.totalorder %s34_s10, %s1378_s11  ;;  %p1384_p2 = scmp.lt.s32.totalorder %s1378_s11, %s1378_s11 }
   0x8   :  { %p1385_p3 = por %p1384_p2, %p1383_p1 }
   0xa   :  { %p1386_p4 = pnand %p1385_p3, %p1379_p0 }
   0xc   :  { %1389 = shalt.err (!%p1386_p4)
}
   0xd   :  { %s1499_s12 = smov 64   ;;  %s1500_s13 = smov 4  }
   0xe   :  { %39 = dma.hbm_to_vmem [thread:$0]  %s1634_s1, 6272, %s34_s10, [#allocation6], %s1499_s12, %s1499_s12, %s1500_s13  }
   0xf   :  { %s1501_s16 = smov [#allocation8]   ;;  %s1502_s18 = smov [#allocation2]  }
  0x10   :  { %s61_s17 = sshll.u32 %s1501_s16, 4  ;;  %s24_s19 = sshll.u32 %s1502_s18, 4  ;;  %s62_s17 = int_to_ptr.vmem [resolvable:$true] %s61_s17  ;;  %s25_s19 = int_to_ptr.vmem [resolvable:$true] %s24_s19 }
  0x11   :  { %s1398_s20 = scalar_lea.vmem %s62_s17, 1024  ;;  %p1403_p6 = scmp.lt.s32.totalorder %s62_s17, %s62_s17 }
  0x12   :  { %p1399_p5 = scmp.ne.s32.totalorder %s62_s17, %s1398_s20  ;;  %p1404_p7 = scmp.lt.s32.totalorder %s1398_s20, %s1398_s20 }
  0x14   :  { %p1405_p8 = por %p1404_p7, %p1403_p6 }
  0x16   :  { %p1406_p9 = pnand %p1405_p8, %p1399_p5 }
  0x18   :  { %1409 = shalt.err (!%p1406_p9)
}
  0x19   :  { %67 = dma.hbm_to_vmem [thread:$0]  %s1638_s5, 1024, %s62_s17, [#allocation9], %s1499_s12, %s1499_s12, %s1500_s13  }
  0x1a   :  { %s1418_s1 = scalar_lea.vmem %s25_s19, 896  ;;  %p1423_p11 = scmp.lt.s32.totalorder %s25_s19, %s25_s19 }
  0x1b   :  { %p1419_p10 = scmp.ne.s32.totalorder %s25_s19, %s1418_s1  ;;  %p1424_p12 = scmp.lt.s32.totalorder %s1418_s1, %s1418_s1 }
  0x1d   :  { %p1425_p13 = por %p1424_p12, %p1423_p11 }
  0x1f   :  { %p1426_p0 = pnand %p1425_p13, %p1419_p10 }
  0x21   :  { %1429 = shalt.err (!%p1426_p0)
}
  0x22   :  { %27 = dma.hbm_to_vmem [thread:$0]  %s1633_s0, 896, %s25_s19, [#allocation3]  }
  0x23   :  { %s1503_s25 = smov [#allocation7]   ;;  %s1504_s27 = smov [#allocation10]  }
  0x24   :  { %s47_s26 = sshll.u32 %s1503_s25, 4  ;;  %s75_s28 = sshll.u32 %s1504_s27, 4  ;;  %s48_s26 = int_to_ptr.vmem [resolvable:$true] %s47_s26  ;;  %s76_s28 = int_to_ptr.vmem [resolvable:$true] %s75_s28 }
  0x25   :  { %s1438_s29 = scalar_lea.vmem %s48_s26, 1024  ;;  %p1443_p2 = scmp.lt.s32.totalorder %s48_s26, %s48_s26 }
  0x26   :  { %p1439_p1 = scmp.ne.s32.totalorder %s48_s26, %s1438_s29  ;;  %p1444_p3 = scmp.lt.s32.totalorder %s1438_s29, %s1438_s29 }
  0x28   :  { %p1445_p4 = por %p1444_p3, %p1443_p2 }
  0x2a   :  { %p1446_p5 = pnand %p1445_p4, %p1439_p1 }
  0x2c   :  { %1449 = shalt.err (!%p1446_p5)
}
  0x2d   :  { %53 = dma.hbm_to_vmem [thread:$0]  %s1636_s3, 1024, %s48_s26, [#allocation6], %s1499_s12, %s1499_s12, %s1500_s13  }
  0x2e   :  { %s1458_s0 = scalar_lea.vmem %s76_s28, 1024  ;;  %p1463_p7 = scmp.lt.s32.totalorder %s76_s28, %s76_s28 }
  0x2f   :  { %p1459_p6 = scmp.ne.s32.totalorder %s76_s28, %s1458_s0  ;;  %p1464_p8 = scmp.lt.s32.totalorder %s1458_s0, %s1458_s0 }
  0x31   :  { %p1465_p9 = por %p1464_p8, %p1463_p7 }
  0x33   :  { %p1466_p10 = pnand %p1465_p9, %p1459_p6 }
  0x35   :  { %1469 = shalt.err (!%p1466_p10)
}
  0x36   :  { %81 = dma.hbm_to_vmem [thread:$0]  %s1640_s7, 1024, %s76_s28, [#allocation9], %s1499_s12, %s1499_s12, %s1500_s13  }
  0x37   :  { %1490 = dma.done.wait [#allocation3], 896  }
  0x38   :  { %1491 = vsyncadd [#allocation3], 4294966400 }
  0x39   :  { %1492 = dma.done.wait [#allocation6], 7296  }
  0x3a   :  { %1493 = vsyncadd [#allocation6], 4294960000 }
  0x3b   :  { %1494 = dma.done.wait [#allocation9], 2048  }
  0x3c   :  { %1495 = vsyncadd [#allocation9], 4294965248  ;;  %v1293_v0 = vld [vmem:[#allocation5 + $0x78] sm:$0xff]   ;;  %v1297_v4 = vld [vmem:[#allocation5 + $0x70] sm:$0xff]   ;;  %v1505_v44 = vmov 0.0   ;;  %vm1506_vm0 = vmmov 0  }
  0x3d   :  { %v1294_v1 = vld [vmem:[#allocation5 + $0x38] sm:$0xff]   ;;  %1122 = vmatprep.subr.bf16.mxu0 %v1293_v0  ;;  %v1298_v5 = vld [vmem:[#allocation5 + $0x30] sm:$0xff]   ;;  %v1301_v8 = vld [vmem:[#allocation5 + $0x68] sm:$0xff]   ;;  %vm513_vm1 = vcmask 130048  }
  0x3e   :  { %v1295_v2 = vld [vmem:[#allocation5 + $0xf8] sm:$0xff]   ;;  %1123 = vmatpush3.bf16.msra.mxu0 %v1294_v1  ;;  %v1299_v6 = vld [vmem:[#allocation5 + $0xf0] sm:$0xff]   ;;  %v1302_v9 = vld [vmem:[#allocation5 + $0x28] sm:$0xff]  }
  0x3f   :  { %v1296_v3 = vld [vmem:[#allocation5 + $0xb8] sm:$0xff]   ;;  %1144 = vmatprep.subr.bf16.mxu1 %v1295_v2  ;;  %1124 = vmatprep.subr.bf16.mxu0 %v1297_v4  ;;  %v1300_v7 = vld [vmem:[#allocation5 + $0xb0] sm:$0xff]   ;;  %v1303_v10 = vld [vmem:[#allocation5 + $0xe8] sm:$0xff]  }
  0x40   :  { %1145 = vmatpush3.bf16.msra.mxu1 %v1296_v3  ;;  %v1304_v11 = vld [vmem:[#allocation5 + $0xa8] sm:$0xff]   ;;  %v1305_v12 = vld [vmem:[#allocation5 + $0x60] sm:$0xff]   ;;  %v1309_v16 = vld [vmem:[#allocation5 + $0x58] sm:$0xff]  }
  0x41   :  { %1146 = vmatprep.subr.bf16.mxu1 %v1299_v6  ;;  %v1306_v13 = vld [vmem:[#allocation5 + $0x20] sm:$0xff]   ;;  %v1310_v17 = vld [vmem:[#allocation5 + $0x18] sm:$0xff]   ;;  %v1313_v20 = vld [vmem:[#allocation5 + $0x50] sm:$0xff]  }
  0x42   :  { %1125 = vmatpush3.bf16.msra.mxu0 %v1298_v5  ;;  %v1307_v14 = vld [vmem:[#allocation5 + $0xe0] sm:$0xff]   ;;  %v1311_v18 = vld [vmem:[#allocation5 + $0xd8] sm:$0xff]   ;;  %v1314_v21 = vld [vmem:[#allocation5 + $0x10] sm:$0xff]  }
  0x43   :  { %1126 = vmatprep.subr.bf16.mxu0 %v1301_v8  ;;  %v1308_v15 = vld [vmem:[#allocation5 + $0xa0] sm:$0xff]   ;;  %v1312_v19 = vld [vmem:[#allocation5 + $0x98] sm:$0xff]   ;;  %v1315_v22 = vld [vmem:[#allocation5 + $0xd0] sm:$0xff]  }
  0x44   :  { %1147 = vmatpush3.bf16.msra.mxu1 %v1300_v7  ;;  %v1316_v23 = vld [vmem:[#allocation5 + $0x90] sm:$0xff]   ;;  %v1317_v24 = vld [vmem:[#allocation5 + $0x48] sm:$0xff]   ;;  %v1321_v28 = vld [vmem:[#allocation5 + $0x40] sm:$0xff]  }
  0x45   :  { %1148 = vmatprep.subr.bf16.mxu1 %v1303_v10  ;;  %v1318_v25 = vld [vmem:[#allocation5 + $0x8] sm:$0xff]   ;;  %v1322_v29 = vld [vmem:[#allocation5] sm:$0xff]   ;;  %v101_v31 = vld [vmem:[#allocation2 + $0x8] sm:$0xff] }
  0x46   :  { %1127 = vmatpush3.bf16.msra.mxu0 %v1302_v9  ;;  %v1319_v26 = vld [vmem:[#allocation5 + $0xc8] sm:$0xff]   ;;  %v1323_v30 = vld [vmem:[#allocation5 + $0xc0] sm:$0xff]   ;;  %v108_v32 = vpack.c.bf16 %v101_v31, %v101_v31  ;;  %v1325_v36 = vld [vmem:[#allocation5 + $0x178] sm:$0xff]  }
  0x47   :  { %1128 = vmatprep.subr.bf16.mxu0 %v1305_v12  ;;  %v1320_v27 = vld [vmem:[#allocation5 + $0x88] sm:$0xff]   ;;  %v1324_v33 = vld [vmem:[#allocation5 + $0x80] sm:$0xff]   ;;  %v1326_v39 = vld [vmem:[#allocation5 + $0x138] sm:$0xff]  }
  0x48   :  { %1149 = vmatpush3.bf16.msra.mxu1 %v1304_v11  ;;  %v100_v34 = vld [vmem:[#allocation2] sm:$0xff]  ;;  %v103_v37 = vld [vmem:[#allocation2 + $0x18] sm:$0xff]  ;;  %549 = vmatprep.mubr.bf16.mxu0 %v108_v32  ;;  %v102_v40 = vld [vmem:[#allocation2 + $0x10] sm:$0xff] }
  0x49   :  { %1150 = vmatprep.subr.bf16.mxu1 %v1307_v14  ;;  %v107_v35 = vpack.c.bf16 %v100_v34, %v100_v34  ;;  %v110_v38 = vpack.c.bf16 %v103_v37, %v103_v37  ;;  %v109_v41 = vpack.c.bf16 %v102_v40, %v102_v40  ;;  %v1327_v42 = vld [vmem:[#allocation5 + $0x170] sm:$0xff]   ;;  %v1329_v45 = vld [vmem:[#allocation5 + $0x168] sm:$0xff]   ;;  %v1331_v47 = vld [vmem:[#allocation5 + $0x160] sm:$0xff]  }
  0x4a   :  { %1129 = vmatpush3.bf16.msra.mxu0 %v1306_v13  ;;  %v1328_v43 = vld [vmem:[#allocation5 + $0x130] sm:$0xff]   ;;  %v1330_v46 = vld [vmem:[#allocation5 + $0x128] sm:$0xff]   ;;  %v1332_v48 = vld [vmem:[#allocation5 + $0x120] sm:$0xff]  }
  0x4b   :  { %1130 = vmatprep.subr.bf16.mxu0 %v1309_v16  ;;  %589 = vmatprep.mubr.bf16.mxu1 %v110_v38  ;;  %v1333_v49 = vld [vmem:[#allocation5 + $0x158] sm:$0xff]   ;;  %v1335_v51 = vld [vmem:[#allocation5 + $0x150] sm:$0xff]   ;;  %v1341_v53 = vld [vmem:[#allocation5 + $0x180] sm:$0xff]  }
  0x4c   :  { %1151 = vmatpush3.bf16.msra.mxu1 %v1308_v15  ;;  %v1334_v50 = vld [vmem:[#allocation5 + $0x118] sm:$0xff]   ;;  %v1336_v52 = vld [vmem:[#allocation5 + $0x110] sm:$0xff]   ;;  %v1337_v55 = vld [vmem:[#allocation5 + $0x148] sm:$0xff]  }
  0x4d   :  { %1152 = vmatprep.subr.bf16.mxu1 %v1311_v18  ;;  %v105_v54 = vld [vmem:[#allocation2 + $0x28] sm:$0xff]  ;;  %v106_v57 = vld [vmem:[#allocation2 + $0x30] sm:$0xff]  ;;  %v1338_v59 = vld [vmem:[#allocation5 + $0x108] sm:$0xff]  }
  0x4e   :  { %1131 = vmatpush3.bf16.msra.mxu0 %v1310_v17  ;;  %v112_v56 = vpack.c.bf16 %v105_v54, %v105_v54  ;;  %v113_v58 = vpack.c.bf16 %v106_v57, %v106_v57  ;;  %v1339_v60 = vld [vmem:[#allocation5 + $0x140] sm:$0xff]   ;;  %v104_v62 = vld [vmem:[#allocation2 + $0x20] sm:$0xff]  ;;  %v1343_v1 = vld [vmem:[#allocation7 + $0x30] sm:$0xff]  }
  0x4f   :  { %1132 = vmatprep.subr.bf16.mxu0 %v1313_v20  ;;  %v1340_v61 = vld [vmem:[#allocation5 + $0x100] sm:$0xff]   ;;  %v111_v63 = vpack.c.bf16 %v104_v62, %v104_v62  ;;  %v1344_v2 = vld [vmem:[#allocation7 + $0x28] sm:$0xff]   ;;  %v1345_v3 = vld [vmem:[#allocation7 + $0x20] sm:$0xff]  }
  0x50   :  { %1153 = vmatpush3.bf16.msra.mxu1 %v1312_v19  ;;  %v1342_v0 = vld [vmem:[#allocation7 + $0x38] sm:$0xff]   ;;  %v1347_v5 = vld [vmem:[#allocation7 + $0x10] sm:$0xff]   ;;  %v1348_v6 = vld [vmem:[#allocation7 + $0x8] sm:$0xff]  }
  0x51   :  { %1154 = vmatprep.subr.bf16.mxu1 %v1315_v22  ;;  %v1346_v4 = vld [vmem:[#allocation7 + $0x18] sm:$0xff]   ;;  %v1349_v7 = vld [vmem:[#allocation7] sm:$0xff]   ;;  %v1351_v9 = vld [vmem:[#allocation8 + $0x30] sm:$0xff]  }
  0x52   :  { %1133 = vmatpush3.bf16.msra.mxu0 %v1314_v21  ;;  %v1350_v8 = vld [vmem:[#allocation8 + $0x38] sm:$0xff]   ;;  %v1352_v10 = vld [vmem:[#allocation8 + $0x28] sm:$0xff]   ;;  %v1353_v11 = vld [vmem:[#allocation8 + $0x20] sm:$0xff]  }
  0x53   :  { %1134 = vmatprep.subr.bf16.mxu0 %v1317_v24  ;;  %v1354_v12 = vld [vmem:[#allocation8 + $0x18] sm:$0xff]   ;;  %v1355_v13 = vld [vmem:[#allocation8 + $0x10] sm:$0xff]   ;;  %v1356_v40 = vld [vmem:[#allocation8 + $0x8] sm:$0xff]  }
  0x54   :  { %1155 = vmatpush3.bf16.msra.mxu1 %v1316_v23  ;;  %v1364_v57 = vld [vmem:[#allocation10 + $0x8] sm:$0xff]  }
  0x55   :  { %1156 = vmatprep.subr.bf16.mxu1 %v1319_v26 }
  0x56   :  { %1135 = vmatpush3.bf16.msra.mxu0 %v1318_v25 }
  0x57   :  { %1136 = vmatprep.subr.bf16.mxu0 %v1321_v28 }
  0x58   :  { %1157 = vmatpush3.bf16.msra.mxu1 %v1320_v27  ;;  %v1044_v27 = vld [vmem:[%s1635_s2] ss:$0 sm:$0xff] }
  0x59   :  { %1158 = vmatprep.subr.bf16.mxu1 %v1323_v30 }
  0x5a   :  { %1137 = vmatpush3.bf16.msra.mxu0 %v1322_v29 }
  0x5b   :  { %1166 = vmatprep.subr.bf16.mxu0 %v1325_v36 }
  0x5c   :  { %1159 = vmatpush3.bf16.msra.mxu1 %v1324_v33 }
  0x5d   :  { %550 = vmatmul.mubr.bf16.vlgmr.msra.gmra.mxu0 %v107_v35  ;;  %1217 = vmatprep.subr.bf16.mxu1 %v1505_v44 }
  0x5e   :  { %1167 = vmatpush3.bf16.msra.mxu0 %v1326_v39  ;;  %629 = vmatprep.mubr.bf16.mxu0 %v112_v56 }
  0x5f   :  { %590 = vmatmul.mubr.bf16.vlgmr.msra.gmra.mxu1 %v109_v41  ;;  %1168 = vmatprep.subr.bf16.mxu0 %v1327_v42  ;;  %v1357_v41 = vld [vmem:[#allocation8] sm:$0xff]   ;;  %v1358_v42 = vld [vmem:[#allocation10 + $0x38] sm:$0xff]  }
  0x60   :  { %1219 = vmatprep.mubr.msk.bf16.mxu1 %vm1506_vm0, %v1505_v44  ;;  %1218 = vmatpush3.bf16.msra.mxu1 %v1341_v53 }
  0x61   :  { %1223 = vmatprep.subr.bf16.mxu1 %v1505_v44 }
  0x62   :  { %1169 = vmatpush3.bf16.msra.mxu0 %v1328_v43  ;;  %v1359_v43 = vld [vmem:[#allocation10 + $0x30] sm:$0xff]  }
  0x63   :  { %1170 = vmatprep.subr.bf16.mxu0 %v1329_v45  ;;  %v1360_v45 = vld [vmem:[#allocation10 + $0x28] sm:$0xff]  }
  0x66   :  { %1171 = vmatpush3.bf16.msra.mxu0 %v1330_v46  ;;  %v1361_v46 = vld [vmem:[#allocation10 + $0x20] sm:$0xff]  }
  0x67   :  { %1172 = vmatprep.subr.bf16.mxu0 %v1331_v47  ;;  %1220 = vmatmul.mubr.msk.bf16.vlgmr.msra.gmra.mxu1 %vm513_vm1, %v113_v58  ;;  %v1362_v47 = vld [vmem:[#allocation10 + $0x18] sm:$0xff]   ;;  %v1365_v58 = vld [vmem:[#allocation10] sm:$0xff]  }
  0x68   :  { %1239 = vmatprep.mubr.msk.bf16.mxu1 %vm1506_vm0, %v1505_v44  ;;  %1224 = vmatpush3.bf16.msra.mxu1 %v1342_v0 }
  0x69   :  { %1225 = vmatprep.subr.bf16.mxu1 %v1505_v44 }
  0x6a   :  { %1173 = vmatpush3.bf16.msra.mxu0 %v1332_v48  ;;  %v1363_v48 = vld [vmem:[#allocation10 + $0x10] sm:$0xff]  }
  0x6b   :  { %1174 = vmatprep.subr.bf16.mxu0 %v1333_v49  ;;  %v1095_v49 = vld [vmem:[%s1637_s4] ss:$0 sm:$0xff] }
  0x6c   :  { %1226 = vmatpush3.bf16.msra.mxu1 %v1343_v1 }
  0x6d   :  { %1227 = vmatprep.subr.bf16.mxu1 %v1505_v44 }
  0x6e   :  { %1175 = vmatpush3.bf16.msra.mxu0 %v1334_v50 }
  0x6f   :  { %1176 = vmatprep.subr.bf16.mxu0 %v1335_v51 }
  0x70   :  { %1228 = vmatpush3.bf16.msra.mxu1 %v1344_v2 }
  0x71   :  { %1229 = vmatprep.subr.bf16.mxu1 %v1505_v44 }
  0x72   :  { %1177 = vmatpush3.bf16.msra.mxu0 %v1336_v52 }
  0x73   :  { %1178 = vmatprep.subr.bf16.mxu0 %v1337_v55 }
  0x74   :  { %1230 = vmatpush3.bf16.msra.mxu1 %v1345_v3  ;;  %v1113_v3 = vld [vmem:[%s1641_s8] ss:$0 sm:$0xff] }
  0x75   :  { %1231 = vmatprep.subr.bf16.mxu1 %v1505_v44 }
  0x76   :  { %1179 = vmatpush3.bf16.msra.mxu0 %v1338_v59  ;;  %v1104_v59 = vld [vmem:[%s1639_s6] ss:$0 sm:$0xff]  ;;  %s1507_s6 = smov [#allocation11]  }
  0x77   :  { %1180 = vmatprep.subr.bf16.mxu0 %v1339_v60  ;;  %s1033_s16 = sshll.u32 %s1507_s6, 4  ;;  %s1034_s16 = int_to_ptr.vmem [resolvable:$true] %s1033_s16 }
  0x78   :  { %1232 = vmatpush3.bf16.msra.mxu1 %v1346_v4  ;;  %s1470_s8 = scalar_lea.vmem %s1034_s16, 128  ;;  %p1475_p12 = scmp.lt.s32.totalorder %s1034_s16, %s1034_s16 }
  0x79   :  { %1233 = vmatprep.subr.bf16.mxu1 %v1505_v44  ;;  %p1471_p11 = scmp.ne.s32.totalorder %s1034_s16, %s1470_s8  ;;  %p1476_p13 = scmp.lt.s32.totalorder %s1470_s8, %s1470_s8 }
  0x7a   :  { %1181 = vmatpush3.bf16.msra.mxu0 %v1340_v61 }
  0x7b   :  { %1243 = vmatprep.subr.bf16.mxu0 %v1505_v44  ;;  %p1477_p0 = por %p1476_p13, %p1475_p12 }
  0x7c   :  { %1234 = vmatpush3.bf16.msra.mxu1 %v1347_v5 }
  0x7d   :  { %630 = vmatmul.mubr.bf16.vlgmr.msra.gmra.mxu0 %v111_v63  ;;  %1235 = vmatprep.subr.bf16.mxu1 %v1505_v44  ;;  %p1478_p1 = pnand %p1477_p0, %p1471_p11 }
  0x7e   :  { %1259 = vmatprep.mubr.msk.bf16.mxu0 %vm1506_vm0, %v1505_v44  ;;  %1244 = vmatpush3.bf16.msra.mxu0 %v1350_v8 }
  0x7f   :  { %1245 = vmatprep.subr.bf16.mxu0 %v1505_v44 }
  0x80   :  { %1236 = vmatpush3.bf16.msra.mxu1 %v1348_v6 }
  0x81   :  { %1237 = vmatprep.subr.bf16.mxu1 %v1505_v44 }
  0x82   :  { %1246 = vmatpush3.bf16.msra.mxu0 %v1351_v9 }
  0x83   :  { %1247 = vmatprep.subr.bf16.mxu0 %v1505_v44 }
  0x84   :  { %1238 = vmatpush3.bf16.msra.mxu1 %v1349_v7 }
  0x85   :  { %1263 = vmatprep.subr.bf16.mxu1 %v1505_v44 }
  0x86   :  { %1248 = vmatpush3.bf16.msra.mxu0 %v1352_v10 }
  0x87   :  { %1249 = vmatprep.subr.bf16.mxu0 %v1505_v44 }
  0x8a   :  { %1250 = vmatpush3.bf16.msra.mxu0 %v1353_v11 }
  0x8b   :  { %1251 = vmatprep.subr.bf16.mxu0 %v1505_v44 }
  0x8e   :  { %1252 = vmatpush3.bf16.msra.mxu0 %v1354_v12 }
  0x8f   :  { %1253 = vmatprep.subr.bf16.mxu0 %v1505_v44 }
  0x92   :  { %1254 = vmatpush3.bf16.msra.mxu0 %v1355_v13 }
  0x93   :  { %1255 = vmatprep.subr.bf16.mxu0 %v1505_v44 }
  0x96   :  { %1256 = vmatpush3.bf16.msra.mxu0 %v1356_v40 }
  0x97   :  { %1257 = vmatprep.subr.bf16.mxu0 %v1505_v44 }
  0x9a   :  { %1258 = vmatpush3.bf16.msra.mxu0 %v1357_v41 }
 0x11d   :  { %v1138_v14 = vpop.f32.mrf.mxu0 }
 0x11f   :  { %v1139_v15 = vpop.f32.mrf.mxu0  ;;  %v1160_v16 = vpop.f32.mrf.mxu1 }
 0x120   :  { %v1140_v26 = vadd.f32 %v1139_v15, %v1138_v14 }
 0x121   :  { %v1141_v17 = vpop.f32.mrf.mxu0  ;;  %v1161_v18 = vpop.f32.mrf.mxu1 }
 0x122   :  { %v552_v28 = vadd.f32 %v1140_v26, %v1044_v27  ;;  %v1162_v29 = vadd.f32 %v1161_v18, %v1160_v16 }
 0x123   :  { %v1142_v19 = vpop.f32.mrf.mxu0  ;;  %v1163_v20 = vpop.f32.mrf.mxu1 }
 0x124   :  { %v592_v32 = vadd.f32 %v1162_v29, %v552_v28 }
 0x125   :  { %v1164_v21 = vpop.f32.mrf.mxu1 }
 0x127   :  { %v671_v22 = vpop.f32.mrf.mxu1 }
 0x129   :  { %v1221_v23 = vpop.f32.mrf.mxu1 }
 0x12b   :  { %v674_v24 = vpop.f32.mrf.mxu1 }
 0x12d   :  { %v1222_v25 = vpop.f32.mrf.mxu1 }
 0x13d   :  { %v1182_v30 = vpop.f32.mrf.mxu0 }
 0x13f   :  { %v1183_v31 = vpop.f32.mrf.mxu0 }
 0x140   :  { %v1184_v33 = vadd.f32 %v1183_v31, %v1182_v30 }
 0x141   :  { %v1185_v34 = vpop.f32.mrf.mxu0 }
 0x142   :  { %v632_v35 = vadd.f32 %v1184_v33, %v592_v32 }
 0x143   :  { %v1186_v36 = vpop.f32.mrf.mxu0 }
 0x144   :  { %v672_v37 = vadd.f32 %v671_v22, %v632_v35 }
 0x146   :  { %v677_v38 = vmax.f32 %v672_v37, 0.0 }
 0x148   :  { %v678_v39 = vpack.c.bf16 %v677_v38, %v677_v38 }
 0x14a   :  { %1240 = vmatmul.mubr.bf16.vlgmr.msra.gmra.mxu1 %v678_v39 }
 0x14b   :  { %1279 = vmatprep.mubr.msk.bf16.mxu1 %vm1506_vm0, %v1505_v44  ;;  %1264 = vmatpush3.bf16.msra.mxu1 %v1358_v42 }
 0x14c   :  { %1265 = vmatprep.subr.bf16.mxu1 %v1505_v44 }
 0x14f   :  { %1266 = vmatpush3.bf16.msra.mxu1 %v1359_v43 }
 0x150   :  { %1267 = vmatprep.subr.bf16.mxu1 %v1505_v44 }
 0x153   :  { %1268 = vmatpush3.bf16.msra.mxu1 %v1360_v45 }
 0x154   :  { %1269 = vmatprep.subr.bf16.mxu1 %v1505_v44 }
 0x157   :  { %1270 = vmatpush3.bf16.msra.mxu1 %v1361_v46 }
 0x158   :  { %1271 = vmatprep.subr.bf16.mxu1 %v1505_v44 }
 0x15b   :  { %1272 = vmatpush3.bf16.msra.mxu1 %v1362_v47 }
 0x15c   :  { %1273 = vmatprep.subr.bf16.mxu1 %v1505_v44 }
 0x15f   :  { %1274 = vmatpush3.bf16.msra.mxu1 %v1363_v48 }
 0x160   :  { %1275 = vmatprep.subr.bf16.mxu1 %v1505_v44 }
 0x163   :  { %1276 = vmatpush3.bf16.msra.mxu1 %v1364_v57 }
 0x164   :  { %1277 = vmatprep.subr.bf16.mxu1 %v1505_v44 }
 0x167   :  { %1278 = vmatpush3.bf16.msra.mxu1 %v1365_v58 }
 0x20a   :  { %v784_v50 = vpop.f32.mrf.mxu1 }
 0x20b   :  { %v785_v51 = vadd.f32 %v1095_v49, %v784_v50 }
 0x20c   :  { %v1241_v52 = vpop.f32.mrf.mxu1 }
 0x20d   :  { %v790_v53 = vmax.f32 %v785_v51, 0.0 }
 0x20e   :  { %v787_v54 = vpop.f32.mrf.mxu1 }
 0x20f   :  { %v791_v55 = vpack.c.bf16 %v790_v53, %v790_v53 }
 0x210   :  { %v1242_v56 = vpop.f32.mrf.mxu1 }
 0x211   :  { %1260 = vmatmul.mubr.bf16.vlgmr.msra.gmra.mxu0 %v791_v55 }
 0x2d1   :  { %v897_v60 = vpop.f32.mrf.mxu0 }
 0x2d2   :  { %v898_v61 = vadd.f32 %v1104_v59, %v897_v60 }
 0x2d3   :  { %v1261_v62 = vpop.f32.mrf.mxu0 }
 0x2d4   :  { %v903_v63 = vmax.f32 %v898_v61, 0.0 }
 0x2d5   :  { %v900_v0 = vpop.f32.mrf.mxu0 }
 0x2d6   :  { %v904_v1 = vpack.c.bf16 %v903_v63, %v903_v63 }
 0x2d7   :  { %v1262_v2 = vpop.f32.mrf.mxu0 }
 0x2d8   :  { %1280 = vmatmul.mubr.bf16.vlgmr.msra.gmra.mxu1 %v904_v1 }
 0x398   :  { %v1010_v4 = vpop.f32.mrf.mxu1 }
 0x399   :  { %v1011_v44 = vadd.f32 %v1113_v3, %v1010_v4 }
 0x39a   :  { %v1281_v5 = vpop.f32.mrf.mxu1 }
 0x39b   :  { %1016 = vmax.xlane.f32.xlu0 %v1011_v44 }
 0x39c   :  { %v1013_v6 = vpop.f32.mrf.mxu1 }
 0x39e   :  { %v1282_v7 = vpop.f32.mrf.mxu1 }
 0x424   :  { %v1017_v8 = vpop.xlane.xlu0 %1016 }
 0x425   :  { %v1018_v9 = vsub.f32 %v1011_v44, %v1017_v8 }
 0x427   :  { %v1019_v10 = vmul.f32 1.442695, %v1018_v9 }
 0x429   :  { %1366 = vpow2.f32 %v1019_v10 }
 0x436   :  { %v1367_v11 = vpop.eup %1366 }
 0x437   :  { %1021 = vadd.xlane.f32.xlu0 %v1367_v11 }
 0x4c0   :  { %v1022_v12 = vpop.xlane.xlu0 %1021 }
 0x4c1   :  { %1368 = vlog2.f32 %v1022_v12 }
 0x4ce   :  { %v1369_v13 = vpop.eup %1368 }
 0x4cf   :  { %v1024_v14 = vmul.f32 0.6931472, %v1369_v13 }
 0x4d1   :  { %v1025_v15 = vsub.f32 %v1018_v9, %v1024_v14 }
 0x4d3   :  { %1026 = vst [vmem:[#allocation11] sm:$0xff] %v1025_v15 }
 0x4d4   :  { %1481 = shalt.err (!%p1478_p1)
}
 0x4d5   :  { %1036 = dma.vmem_to_hbm [thread:$0]  %s1034_s16, 128, %s1642_s9, [#allocation4]  }
 0x4d6   :  { %1496 = dma.done.wait [#allocation4], 128  }
 0x4d7   :  { %1497 = vsyncadd [#allocation4], 4294967168 }
 0x4d8   :  { %1040 = vsyncpa [#allocation3], 1 }
 0x4d9   :  { %1041 = vsyncpa [#allocation6], 1 }
 0x4da   :  { %1042 = vsyncpa [#allocation9], 1 }
 0x4db   :  { %1043 = vsyncpa [#allocation4], 1 }

</bundles_post_ra>
